<compile_context>
chip_gen: v7x
topology: tpu7x:2x2x1
jax: 0.10.0
libtpu: 0.0.40
codegen_flags: <defaults>
</compile_context>

<pallas_src>
import jax
import jax.numpy as jnp
from jax.experimental import pallas as pl
from jax.experimental.pallas import tpu as pltpu

_HIDDEN = 256


def _mlp_kernel(xt_ref, xf_ref, w1t_ref, w1f_ref, b1_ref, w2_ref, b2_ref, o_ref):
    """out = relu([x_t | x_f] @ W1 + b1) @ W2 + b2 for one batch tile.

    The torch.cat is expressed as two K-chunks of one accumulation
    (x_t @ W1_t + x_f @ W1_f), so no concatenated activation ever hits HBM.
    """
    xt = xt_ref[...].astype(jnp.bfloat16)   # cast in VMEM; no extra HBM pass
    xf = xf_ref[...].astype(jnp.bfloat16)
    h = jnp.dot(xt, w1t_ref[...], preferred_element_type=jnp.float32)
    h = h + jnp.dot(xf, w1f_ref[...], preferred_element_type=jnp.float32)
    h = jnp.maximum(h + b1_ref[...], 0.0)   # bias + ReLU in f32
    # Dropout(0.3) is identity in eval mode (this kernel is inference-only).
    # TODO(synk): training-mode dropout (pltpu.prng_seed + prng_random_bits mask + 1/(1-p) scale).
    out = jnp.dot(h.astype(jnp.bfloat16), w2_ref[...],
                  preferred_element_type=jnp.float32) + b2_ref[...]
    o_ref[...] = out.astype(o_ref.dtype)


def _round_up(x, m):
    return ((x + m - 1) // m) * m


def _batch_tile(B, block_b):
    """Batch tile: big enough to amortize the ~0.35us/step pipeline overhead,
    but split into >=2 programs when possible so v7x's two TensorCores both
    get work (grid axis is marked "parallel")."""
    if B < 16:
        return B                                        # one full-batch block
    tb = min(block_b, _round_up(pl.cdiv(B, 2), 8))       # >=2 grid steps
    return min(tb, _round_up(B, 8))


def pack_params(w1_torch, b1_torch, w2_torch, b2_torch, text_feature_size):
    """One-time (init-time) conversion from PyTorch nn.Linear layout.

    PyTorch stores Linear weights as (out, in); we transpose to (in, out),
    split W1 into its text/face row blocks, and cast matmul operands to bf16.
    Biases stay f32.  None of this runs per call.
    """
    H, K = w1_torch.shape
    C, H2 = w2_torch.shape
    assert H == H2
    T = text_feature_size
    assert 0 < T < K
    w1 = jnp.asarray(w1_torch).T.astype(jnp.bfloat16)             # (K, H)
    return {
        "w1t": w1[:T],                                            # (T, H) bf16
        "w1f": w1[T:],                                            # (F, H) bf16
        "b1": jnp.asarray(b1_torch).reshape(1, H).astype(jnp.float32),
        "w2": jnp.asarray(w2_torch).T.astype(jnp.bfloat16),       # (H, C) bf16
        "b2": jnp.asarray(b2_torch).reshape(1, C).astype(jnp.float32),
    }


def init_params(key, text_feature_size, face_feature_size, num_classes, hidden=_HIDDEN):
    in_dim = text_feature_size + face_feature_size
    k1, k2, k3, k4 = jax.random.split(key, 4)
    bound1 = 1.0 / jnp.sqrt(in_dim)
    bound2 = 1.0 / jnp.sqrt(hidden)
    w1 = jax.random.uniform(k1, (hidden, in_dim), jnp.float32, -bound1, bound1)
    b1 = jax.random.uniform(k2, (hidden,), jnp.float32, -bound1, bound1)
    w2 = jax.random.uniform(k3, (num_classes, hidden), jnp.float32, -bound2, bound2)
    b2 = jax.random.uniform(k4, (num_classes,), jnp.float32, -bound2, bound2)
    return pack_params(w1, b1, w2, b2, text_feature_size)


def multimodal_forward(text_features, face_features, params, *, block_b=4096):
    B, T = text_features.shape
    Bf, F = face_features.shape
    assert Bf == B
    w1t, w1f, b1 = params["w1t"], params["w1f"], params["b1"]
    w2, b2 = params["w2"], params["b2"]
    assert w1t.shape[0] == T and w1f.shape[0] == F
    H = w1t.shape[1]
    C = w2.shape[1]

    tb = _batch_tile(B, block_b)
    grid = (pl.cdiv(B, tb),)

    return pl.pallas_call(
        _mlp_kernel,
        out_shape=jax.ShapeDtypeStruct((B, C), jnp.float32),
        grid=grid,
        in_specs=[
            pl.BlockSpec((tb, T), lambda i: (i, 0)),   # text activations (batch-tiled)
            pl.BlockSpec((tb, F), lambda i: (i, 0)),   # face activations (batch-tiled)
            # Constant-index blocks: fetched once, VMEM-resident across the grid.
            pl.BlockSpec((T, H), lambda i: (0, 0)),
            pl.BlockSpec((F, H), lambda i: (0, 0)),
            pl.BlockSpec((1, H), lambda i: (0, 0)),
            pl.BlockSpec((H, C), lambda i: (0, 0)),
            pl.BlockSpec((1, C), lambda i: (0, 0)),
        ],
        # Logits written directly at (B, num_classes): no lane padding in HBM,
        # no downstream slice pass.
        out_specs=pl.BlockSpec((tb, C), lambda i: (i, 0)),
        compiler_params=pltpu.CompilerParams(
            dimension_semantics=("parallel",),
            vmem_limit_bytes=32 * 1024 * 1024,
        ),
    )(text_features, face_features, w1t, w1f, b1, w2, b2)


def reference_forward(text_features, face_features, params):
    """Pure-JAX reference using the same bf16-rounded operands as the kernel."""
    xt = text_features.astype(jnp.bfloat16).astype(jnp.float32)
    xf = face_features.astype(jnp.bfloat16).astype(jnp.float32)
    h = xt @ params["w1t"].astype(jnp.float32) + xf @ params["w1f"].astype(jnp.float32)
    h = jnp.maximum(h + params["b1"], 0.0)
    h = h.astype(jnp.bfloat16).astype(jnp.float32)
    return h @ params["w2"].astype(jnp.float32) + params["b2"]


if __name__ == "__main__":
    batch = 8
    text_feature_size = 32
    face_feature_size = 16
    num_classes = 8

    key = jax.random.PRNGKey(0)
    k_text, k_face, k_params = jax.random.split(key, 3)

    text_features = jax.random.normal(k_text, (batch, text_feature_size), jnp.float32)
    face_features = jax.random.normal(k_face, (batch, face_feature_size), jnp.float32)
    params = init_params(k_params, text_feature_size, face_feature_size, num_classes)

    out = multimodal_forward(text_features, face_features, params)
    out = jax.block_until_ready(out)

    ref = reference_forward(text_features, face_features, params)
    assert out.shape == (batch, num_classes), out.shape
    err = float(jnp.max(jnp.abs(out - ref)))
    assert jnp.allclose(out, ref, atol=2e-3, rtol=2e-3), f"max abs err {err}"

    print("KERNEL_OK")
</pallas_src>

<mosaic_0001>
module attributes {stable_mosaic.version = 11 : i64} {
  func.func @_mlp_kernel(%arg0: i32, %arg1: memref<8x32xf32, #tpu.memory_space<vmem>>, %arg2: memref<8x16xf32, #tpu.memory_space<vmem>>, %arg3: memref<32x256xbf16, #tpu.memory_space<vmem>>, %arg4: memref<16x256xbf16, #tpu.memory_space<vmem>>, %arg5: memref<1x256xf32, #tpu.memory_space<vmem>>, %arg6: memref<256x8xbf16, #tpu.memory_space<vmem>>, %arg7: memref<1x8xf32, #tpu.memory_space<vmem>>, %arg8: memref<8x8xf32, #tpu.memory_space<vmem>>) attributes {dimension_semantics = [#tpu.dimension_semantics<parallel>], iteration_bounds = array<i64: 1>, scalar_prefetch = 0 : i64, scratch_operands = 0 : i64, tpu.core_type = #tpu.core_type<tc>, window_params = [{transform_indices = @transform_0, window_bounds = array<i64: 8, 32>}, {transform_indices = @transform_1, window_bounds = array<i64: 8, 16>}, {pipeline_mode = #tpu.pipeline_mode<synchronous>, transform_indices = @transform_2, window_bounds = array<i64: 32, 256>}, {pipeline_mode = #tpu.pipeline_mode<synchronous>, transform_indices = @transform_3, window_bounds = array<i64: 16, 256>}, {pipeline_mode = #tpu.pipeline_mode<synchronous>, transform_indices = @transform_4, window_bounds = array<i64: 1, 256>}, {pipeline_mode = #tpu.pipeline_mode<synchronous>, transform_indices = @transform_5, window_bounds = array<i64: 256, 8>}, {pipeline_mode = #tpu.pipeline_mode<synchronous>, transform_indices = @transform_6, window_bounds = array<i64: 1, 8>}, {transform_indices = @transform_7, window_bounds = array<i64: 8, 8>}]} {
    %c0 = arith.constant 0 : index
    %c0_0 = arith.constant 0 : index
    %0 = vector.load %arg1[%c0, %c0_0] : memref<8x32xf32, #tpu.memory_space<vmem>>, vector<8x32xf32>
    %1 = arith.truncf %0 : vector<8x32xf32> to vector<8x32xbf16>
    %c0_1 = arith.constant 0 : index
    %c0_2 = arith.constant 0 : index
    %2 = vector.load %arg2[%c0_1, %c0_2] : memref<8x16xf32, #tpu.memory_space<vmem>>, vector<8x16xf32>
    %3 = arith.truncf %2 : vector<8x16xf32> to vector<8x16xbf16>
    %c0_3 = arith.constant 0 : index
    %c0_4 = arith.constant 0 : index
    %4 = vector.load %arg3[%c0_3, %c0_4] : memref<32x256xbf16, #tpu.memory_space<vmem>>, vector<32x256xbf16>
    %cst = arith.constant dense<0.000000e+00> : vector<8x256xf32>
    %5 = tpu.matmul %1, %4, %cst {dimension_numbers = #tpu.dot_dimension_numbers<[1], [0], [0], [1], [0, 0, 1, 1], [], []>} : vector<8x32xbf16>, vector<32x256xbf16>, vector<8x256xf32> -> vector<8x256xf32>
    %c0_5 = arith.constant 0 : index
    %c0_6 = arith.constant 0 : index
    %6 = vector.load %arg4[%c0_5, %c0_6] : memref<16x256xbf16, #tpu.memory_space<vmem>>, vector<16x256xbf16>
    %cst_7 = arith.constant dense<0.000000e+00> : vector<8x256xf32>
    %7 = tpu.matmul %3, %6, %cst_7 {dimension_numbers = #tpu.dot_dimension_numbers<[1], [0], [0], [1], [0, 0, 1, 1], [], []>} : vector<8x16xbf16>, vector<16x256xbf16>, vector<8x256xf32> -> vector<8x256xf32>
    %8 = arith.addf %5, %7 : vector<8x256xf32>
    %c0_8 = arith.constant 0 : index
    %c0_9 = arith.constant 0 : index
    %9 = vector.load %arg5[%c0_8, %c0_9] : memref<1x256xf32, #tpu.memory_space<vmem>>, vector<1x256xf32>
    %10 = vector.broadcast %9 : vector<1x256xf32> to vector<8x256xf32>
    %11 = arith.addf %8, %10 : vector<8x256xf32>
    %cst_10 = arith.constant 0.000000e+00 : f32
    %12 = vector.broadcast %cst_10 : f32 to vector<8x256xf32>
    %13 = arith.maximumf %11, %12 : vector<8x256xf32>
    %14 = arith.truncf %13 : vector<8x256xf32> to vector<8x256xbf16>
    %c0_11 = arith.constant 0 : index
    %c0_12 = arith.constant 0 : index
    %15 = vector.load %arg6[%c0_11, %c0_12] : memref<256x8xbf16, #tpu.memory_space<vmem>>, vector<256x8xbf16>
    %cst_13 = arith.constant dense<0.000000e+00> : vector<8x8xf32>
    %16 = tpu.matmul %14, %15, %cst_13 {dimension_numbers = #tpu.dot_dimension_numbers<[1], [0], [0], [1], [0, 0, 1, 1], [], []>} : vector<8x256xbf16>, vector<256x8xbf16>, vector<8x8xf32> -> vector<8x8xf32>
    %c0_14 = arith.constant 0 : index
    %c0_15 = arith.constant 0 : index
    %17 = vector.load %arg7[%c0_14, %c0_15] : memref<1x8xf32, #tpu.memory_space<vmem>>, vector<1x8xf32>
    %18 = vector.broadcast %17 : vector<1x8xf32> to vector<8x8xf32>
    %19 = arith.addf %16, %18 : vector<8x8xf32>
    %c0_16 = arith.constant 0 : index
    %c0_17 = arith.constant 0 : index
    %20 = vector.load %arg8[%c0_16, %c0_17] : memref<8x8xf32, #tpu.memory_space<vmem>>, vector<8x8xf32>
    tpu.vector_store %arg8[%c0_16, %c0_17], %19 {strides = array<i32>} : memref<8x8xf32, #tpu.memory_space<vmem>>, vector<8x8xf32>,
    return
  }
  func.func @transform_0(%arg0: i32) -> (i32, i32) {
    %c0_i32 = arith.constant 0 : i32
    %c0_i32_0 = arith.constant 0 : i32
    return %arg0, %c0_i32 : i32, i32
  }
  func.func @transform_1(%arg0: i32) -> (i32, i32) {
    %c0_i32 = arith.constant 0 : i32
    %c0_i32_0 = arith.constant 0 : i32
    return %arg0, %c0_i32 : i32, i32
  }
  func.func @transform_2(%arg0: i32) -> (i32, i32) {
    %c0_i32 = arith.constant 0 : i32
    %c0_i32_0 = arith.constant 0 : i32
    %c0_i32_1 = arith.constant 0 : i32
    return %c0_i32, %c0_i32_0 : i32, i32
  }
  func.func @transform_3(%arg0: i32) -> (i32, i32) {
    %c0_i32 = arith.constant 0 : i32
    %c0_i32_0 = arith.constant 0 : i32
    %c0_i32_1 = arith.constant 0 : i32
    return %c0_i32, %c0_i32_0 : i32, i32
  }
  func.func @transform_4(%arg0: i32) -> (i32, i32) {
    %c0_i32 = arith.constant 0 : i32
    %c0_i32_0 = arith.constant 0 : i32
    %c0_i32_1 = arith.constant 0 : i32
    return %c0_i32, %c0_i32_0 : i32, i32
  }
  func.func @transform_5(%arg0: i32) -> (i32, i32) {
    %c0_i32 = arith.constant 0 : i32
    %c0_i32_0 = arith.constant 0 : i32
    %c0_i32_1 = arith.constant 0 : i32
    return %c0_i32, %c0_i32_0 : i32, i32
  }
  func.func @transform_6(%arg0: i32) -> (i32, i32) {
    %c0_i32 = arith.constant 0 : i32
    %c0_i32_0 = arith.constant 0 : i32
    %c0_i32_1 = arith.constant 0 : i32
    return %c0_i32, %c0_i32_0 : i32, i32
  }
  func.func @transform_7(%arg0: i32) -> (i32, i32) {
    %c0_i32 = arith.constant 0 : i32
    %c0_i32_0 = arith.constant 0 : i32
    return %arg0, %c0_i32 : i32, i32
  }
}

</mosaic_0001>

<bundles_post_ra>
// kernel: tpu_custom_call.1
= control target key start
LH: loop header
LB: loop body
LE: loop exit
PB: predicated region body
PF: predicated region fallthrough
CT: control target
= control target key end

     0   :  { %v465_v2 = vmov 0   ;;  %vm48_vm0 = vcmask 130048   ;;  %vm113_vm1 = vcmask 261120   ;;  %s597_s0 = inlined_call_operand.vmem [shape: f32[8,32], index: 0, kind: input, shape index: {}]   ;;  %s598_s1 = inlined_call_operand.vmem [shape: f32[8,16], index: 1, kind: input, shape index: {}]   ;;  %s599_s2 = inlined_call_operand.vmem [shape: bf16[32,256], index: 2, kind: input, shape index: {}]   ;;  %s600_s3 = inlined_call_operand.vmem [shape: bf16[16,256], index: 3, kind: input, shape index: {}]   ;;  %s601_s4 = inlined_call_operand.vmem [shape: f32[1,256], index: 4, kind: input, shape index: {}]   ;;  %s602_s5 = inlined_call_operand.vmem [shape: bf16[256,8], index: 5, kind: input, shape index: {}]   ;;  %s603_s6 = inlined_call_operand.vmem [shape: f32[1,8], index: 6, kind: input, shape index: {}]   ;;  %s604_s7 = inlined_call_operand.hbm [shape: f32[8,8], index: 7, kind: output, shape index: {}]  }
   0x1   :  { %v416_v0 = vld [vmem:[%s600_s3 + $0x4] ss:$8 sps:$4 sm:$0xff]   ;;  %v418_v1 = vld [vmem:[%s600_s3] ss:$8 sps:$4 sm:$0xff]   ;;  %84 = vmatprep.mubr.bf16.mxu1 %v465_v2  ;;  %v424_v7 = vld [vmem:[%s599_s2 + $0x14] ss:$8 sps:$4 sm:$0xff]  }
   0x2   :  { %v30_v3 = vld [vmem:[%s598_s1] sm:$0xff]  ;;  %52 = vmatprep.subr.bf16.mxu1 %v416_v0  ;;  %v422_v8 = vld [vmem:[%s599_s2 + $0x10] ss:$8 sps:$4 sm:$0xff]   ;;  %v427_v12 = vld [vmem:[%s602_s5 + $0x48] sm:$0xff]  }
   0x3   :  { %v31_v4 = vpack.c.bf16 %v30_v3, %v30_v3  ;;  %v421_v5 = vld [vmem:[%s599_s2 + $0x4] ss:$8 sps:$4 sm:$0xff]   ;;  %53 = vmatpush1.bf16.msra.mxu1 %v418_v1  ;;  %v419_v6 = vld [vmem:[%s599_s2] ss:$8 sps:$4 sm:$0xff]   ;;  %v429_v15 = vld [vmem:[%s602_s5 + $0x50] sm:$0xff]  }
   0x4   :  { %117 = vmatprep.subr.bf16.mxu1 %v421_v5  ;;  %v28_v9 = vld [vmem:[%s597_s0] sm:$0xff]  ;;  %v428_v13 = vld [vmem:[%s602_s5 + $0x8] sm:$0xff]   ;;  %v430_v16 = vld [vmem:[%s602_s5 + $0x10] sm:$0xff]  }
   0x5   :  { %v425_v10 = vld [vmem:[%s602_s5 + $0x40] sm:$0xff]   ;;  %v29_v14 = vpack.c.bf16 %v28_v9, %v28_v9  ;;  %v431_v17 = vld [vmem:[%s602_s5 + $0x58] sm:$0xff]  }
   0x6   :  { %369 = vmatmul.mubr.msk.bf16.vlgmr.msra.gmra.mrb[0].mxu1 %vm48_vm0, %v31_v4  ;;  %v426_v11 = vld [vmem:[%s602_s5] sm:$0xff]   ;;  %392 = vmatprep.subr.bf16.mxu0 %v425_v10 }
   0x7   :  { %118 = vmatpush1.bf16.msra.mxu1 %v419_v6  ;;  %149 = vmatprep.mubr.bf16.mxu1 %v465_v2 }
   0x8   :  { %119 = vmatprep.subr.bf16.mxu1 %v424_v7  ;;  %393 = vmatpush3.bf16.msra.mxu0 %v426_v11 }
   0x9   :  { %394 = vmatprep.subr.bf16.mxu0 %v427_v12 }
   0xb   :  { %120 = vmatpush1.bf16.msra.mxu1 %v422_v8 }
   0xc   :  { %395 = vmatpush3.bf16.msra.mxu0 %v428_v13 }
   0xd   :  { %396 = vmatprep.subr.bf16.mxu0 %v429_v15 }
   0xe   :  { %374 = vmatmul.mubr.msk.bf16.vlgmr.msra.gmra.mrb[4].mxu1 %vm113_vm1, %v29_v14 }
  0x10   :  { %397 = vmatpush3.bf16.msra.mxu0 %v430_v16 }
  0x11   :  { %12 = vsyncpa [#allocation3], 0  ;;  %398 = vmatprep.subr.bf16.mxu0 %v431_v17  ;;  %v432_v18 = vld [vmem:[%s602_s5 + $0x18] sm:$0xff]   ;;  %v433_v19 = vld [vmem:[%s602_s5 + $0x60] sm:$0xff]   ;;  %v160_v27 = vlaneseq  ;;  %s466_s0 = smov [#allocation2]   ;;  %vm351_vm2 = vcmask 64512  }
  0x12   :  { %v434_v20 = vld [vmem:[%s602_s5 + $0x20] sm:$0xff]   ;;  %v435_v21 = vld [vmem:[%s602_s5 + $0x68] sm:$0xff]   ;;  %v437_v23 = vld [vmem:[%s602_s5 + $0x70] sm:$0xff]   ;;  %s359_s21 = sshll.u32 %s466_s0, 4  ;;  %s360_s21 = int_to_ptr.vmem [resolvable:$true] %s359_s21 }
  0x13   :  { %v436_v22 = vld [vmem:[%s602_s5 + $0x28] sm:$0xff]   ;;  %v438_v24 = vld [vmem:[%s602_s5 + $0x30] sm:$0xff]   ;;  %v439_v25 = vld [vmem:[%s602_s5 + $0x78] sm:$0xff]   ;;  %v161_v28 = vshrl.u32 %v160_v27, 7  ;;  %s441_s22 = scalar_lea.vmem %s360_s21, 128  ;;  %p446_p1 = scmp.lt.s32.totalorder %s360_s21, %s360_s21 }
  0x14   :  { %399 = vmatpush3.bf16.msra.mxu0 %v432_v18  ;;  %v440_v26 = vld [vmem:[%s602_s5 + $0x38] sm:$0xff]   ;;  %v158_v34 = vld [vmem:[%s601_s4] sm:$0x3]  ;;  %p442_p0 = scmp.ne.s32.totalorder %s360_s21, %s441_s22  ;;  %p447_p2 = scmp.lt.s32.totalorder %s441_s22, %s441_s22 }
  0x15   :  { %400 = vmatprep.subr.bf16.mxu0 %v433_v19  ;;  %v162_v33 = vsub.s32 0, %v161_v28  ;;  %v166_v35 = vsub.s32 1, %v161_v28  ;;  %v375_v51 = vld [vmem:[%s603_s6] ss:$0 sm:$0xff] }
  0x16   :  { %p448_p3 = por %p447_p2, %p446_p1 }
  0x17   :  { %v163_v36 = vrot.slane %v158_v34, %v162_v33  ;;  %v167_v38 = vrot.slane %v158_v34, %v166_v35 }
  0x18   :  { %401 = vmatpush3.bf16.msra.mxu0 %v434_v20  ;;  %p449_p4 = pnand %p448_p3, %p442_p0 }
  0x19   :  { %402 = vmatprep.subr.bf16.mxu0 %v435_v21 }
  0x1c   :  { %403 = vmatpush3.bf16.msra.mxu0 %v436_v22 }
  0x1d   :  { %404 = vmatprep.subr.bf16.mxu0 %v437_v23 }
  0x20   :  { %405 = vmatpush3.bf16.msra.mxu0 %v438_v24 }
  0x21   :  { %406 = vmatprep.subr.bf16.mxu0 %v439_v25 }
  0x24   :  { %407 = vmatpush3.bf16.msra.mxu0 %v440_v26 }
  0xd9   :  { %v86_v29 = vpop.f32.mrb[0].mxu1 }
  0xda   :  { %v88_v30 = vpop.f32.mrb[1].mxu1 }
  0xdb   :  { %v90_v31 = vpop.f32.mrb[2].mxu1 }
  0xdc   :  { %v91_v32 = vpop.f32.mrb[3].mxu1 }
  0xe1   :  { %v151_v37 = vpop.f32.mrb[4].mxu1 }
  0xe2   :  { %v152_v39 = vadd.f32 %v151_v37, %v86_v29  ;;  %v153_v40 = vpop.f32.mrb[5].mxu1 }
  0xe3   :  { %v154_v41 = vadd.f32 %v153_v40, %v88_v30  ;;  %v155_v42 = vpop.f32.mrb[6].mxu1 }
  0xe4   :  { %v170_v43 = vadd.f32 %v163_v36, %v152_v39  ;;  %v156_v44 = vpop.f32.mrb[7].mxu1 }
  0xe5   :  { %v171_v45 = vadd.f32 %v167_v38, %v154_v41 }
  0xe6   :  { %v172_v46 = vmax.f32 %v170_v43, 0.0 }
  0xe7   :  { %v173_v47 = vmax.f32 %v171_v45, 0.0 }
  0xe8   :  { %v174_v49 = vpack.c.bf16 %v172_v46, %v172_v46 }
  0xe9   :  { %v175_v48 = vpack.c.bf16 %v173_v47, %v173_v47 }
  0xeb   :  { %343 = vmatprep.mubr.bf16.mxu0 %v175_v48 }
  0xec   :  { %344 = vmatmul.mubr.bf16.vlgmr.msra.gmra.mrb[0].mxu0 %v174_v49 }
 0x1bf   :  { %v408_v50 = vpop.f32.mrb[0].mxu0 }
 0x1c0   :  { %v409_v52 = vpop.f32.mrb[1].mxu0 }
 0x1c1   :  { %v410_v53 = vadd.f32 %v409_v52, %v408_v50  ;;  %v411_v54 = vpop.f32.mrb[2].mxu0 }
 0x1c2   :  { %v412_v55 = vpop.f32.mrb[3].mxu0 }
 0x1c3   :  { %v346_v56 = vadd.f32 %v410_v53, %v375_v51 }
 0x1c5   :  { %352 = vst.msk [vmem:[#allocation2] sm:$0xff] %vm351_vm2, %v346_v56 }
 0x1c6   :  { %452 = shalt.err (!%p449_p4)
}
 0x1c7   :  { %s453_s6 = scalar_lea.hbm %s604_s7, 128 }
 0x1c8   :  { %p454_p5 = scmp.ne.s32.totalorder %s604_s7, %s453_s6  ;;  %p457_p6 = scmp.lt.u32.totalorder %s453_s6, %s604_s7 }
 0x1ca   :  { %p459_p7 = pnand %p457_p6, %p454_p5 }
 0x1cc   :  { %462 = shalt.err (!%p459_p7)
}
 0x1cd   :  { %362 = dma.vmem_to_hbm [thread:$0]  %s360_s21, 128, %s604_s7, [#allocation3]  }
 0x1ce   :  { %463 = dma.done.wait [#allocation3], 128  }
 0x1cf   :  { %464 = vsyncadd [#allocation3], 4294967168 }
 0x1d0   :  { %366 = vsyncpa [#allocation3], 1 }

</bundles_post_ra>
